<compile_context>
chip_gen: v7x
topology: tpu7x:2x2x1
jax: 0.10.0
libtpu: 0.0.40
codegen_flags: <defaults>
</compile_context>

<pallas_src>
import jax
import jax.numpy as jnp
from jax.experimental import pallas as pl
from jax.experimental.pallas import tpu as pltpu


def _actor_kernel(x_ref, w1_ref, b1_ref, w2_ref, b2_ref,
                  w3_ref, b3_ref, wh_ref, bh_ref, o_ref):
    # One batch tile. Dots take bf16 operands and accumulate in f32 on the MXU;
    # bias add / ReLU / tanh run in f32 on the VPU / EUP.
    x = x_ref[...]                                                    # bf16

    h = jnp.dot(x, w1_ref[...], preferred_element_type=jnp.float32) + b1_ref[...]
    h = jnp.maximum(h, 0.0).astype(jnp.bfloat16)

    h = jnp.dot(h, w2_ref[...], preferred_element_type=jnp.float32) + b2_ref[...]
    h = jnp.maximum(h, 0.0).astype(jnp.bfloat16)

    h = jnp.dot(h, w3_ref[...], preferred_element_type=jnp.float32) + b3_ref[...]
    h = jnp.maximum(h, 0.0).astype(jnp.bfloat16)

    a = jnp.dot(h, wh_ref[...], preferred_element_type=jnp.float32) + bh_ref[...]
    o_ref[...] = jnp.tanh(a).astype(o_ref.dtype)


def _max_batch_tile():
    # 128 rows saturate v5e's 128x128 MXU; 256 for v6e/v7x's 256x256 MXU.
    try:
        kind = jax.devices()[0].device_kind.lower()
    except Exception:
        kind = ""
    return 128 if "v5" in kind else 256


def _round_up(x, m):
    return ((x + m - 1) // m) * m


@jax.jit
def ddpg_actor_forward(x, params):
    """DDPGActor forward. x: [B, obs] f32 -> [B, action_size] f32."""
    B, obs = x.shape
    node = params["w1"].shape[1]
    act = params["wh"].shape[1]

    # --- batch tiling: single grid step for small B, big tiles for large B ---
    max_tile = _max_batch_tile()
    b8 = _round_up(B, 8)
    tile_b = b8 if b8 <= max_tile else max_tile
    Bp = _round_up(B, tile_b)

    xp = x.astype(jnp.bfloat16)
    if Bp != B:
        xp = jnp.pad(xp, ((0, Bp - B), (0, 0)))

    # --- lane-dense head: zero-pad output columns to a multiple of 128 ---
    act_p = _round_up(act, 128)
    wh = params["wh"].astype(jnp.bfloat16)
    bh = params["bh"].astype(jnp.float32)
    if act_p != act:
        wh = jnp.pad(wh, ((0, 0), (0, act_p - act)))
        bh = jnp.pad(bh, ((0, 0), (0, act_p - act)))

    w1 = params["w1"].astype(jnp.bfloat16)
    w2 = params["w2"].astype(jnp.bfloat16)
    w3 = params["w3"].astype(jnp.bfloat16)
    b1 = params["b1"].astype(jnp.float32)
    b2 = params["b2"].astype(jnp.float32)
    b3 = params["b3"].astype(jnp.float32)

    full = lambda i: (0, 0)   # weights / biases: whole array, VMEM-resident
    out = pl.pallas_call(
        _actor_kernel,
        out_shape=jax.ShapeDtypeStruct((Bp, act_p), jnp.float32),
        grid_spec=pltpu.PrefetchScalarGridSpec(
            num_scalar_prefetch=0,
            grid=(Bp // tile_b,),
            in_specs=[
                pl.BlockSpec((tile_b, obs), lambda i: (i, 0)),   # x batch tile
                pl.BlockSpec((obs, node), full),                 # w1
                pl.BlockSpec((1, node), full),                   # b1
                pl.BlockSpec((node, node), full),                # w2
                pl.BlockSpec((1, node), full),                   # b2
                pl.BlockSpec((node, node), full),                # w3
                pl.BlockSpec((1, node), full),                   # b3
                pl.BlockSpec((node, act_p), full),               # wh (padded)
                pl.BlockSpec((1, act_p), full),                  # bh (padded)
            ],
            out_specs=pl.BlockSpec((tile_b, act_p), lambda i: (i, 0)),
        ),
        compiler_params=pltpu.CompilerParams(
            dimension_semantics=("parallel",)),
    )(xp, w1, b1, w2, b2, w3, b3, wh, bh)

    return out[:B, :act]


def init_params(key, obs_size, action_size, node_size=128):
    """Deterministic synthetic parameters (PyTorch-Linear-style uniform init).

    Weights stored pre-transposed as [in, out]; PyTorch stores [out, in] and
    computes x @ W.T, which is identical to x @ W_here.
    """
    dims = [(obs_size, node_size), (node_size, node_size),
            (node_size, node_size), (node_size, action_size)]
    names = ["1", "2", "3", "h"]
    params = {}
    for (fan_in, fan_out), n in zip(dims, names):
        key, kw, kb = jax.random.split(key, 3)
        bound = float(fan_in) ** -0.5
        params[f"w{n}"] = jax.random.uniform(
            kw, (fan_in, fan_out), jnp.float32, -bound, bound)
        params[f"b{n}"] = jax.random.uniform(
            kb, (1, fan_out), jnp.float32, -bound, bound)
    return params


def _reference_forward(x, params):
    # Numerics match the kernel: bf16 dot operands, f32 accumulation,
    # bias/ReLU/tanh in f32.
    def dot(a, w):
        return jnp.dot(a.astype(jnp.bfloat16), w.astype(jnp.bfloat16),
                       preferred_element_type=jnp.float32)
    h = jnp.maximum(dot(x, params["w1"]) + params["b1"], 0.0)
    h = jnp.maximum(dot(h, params["w2"]) + params["b2"], 0.0)
    h = jnp.maximum(dot(h, params["w3"]) + params["b3"], 0.0)
    return jnp.tanh(dot(h, params["wh"]) + params["bh"])


if __name__ == "__main__":
    key = jax.random.PRNGKey(0)
    obs_size, action_size, node_size = 24, 8, 128
    batch = 2

    key, kx, kp = jax.random.split(key, 3)
    x = jax.random.normal(kx, (batch, obs_size), jnp.float32)
    params = init_params(kp, obs_size, action_size, node_size)

    a = ddpg_actor_forward(x, params)
    a = jax.block_until_ready(a)

    a_ref = _reference_forward(x, params)
    assert a.shape == (batch, action_size), a.shape
    assert jnp.allclose(a, a_ref, atol=1e-3, rtol=1e-3), (a, a_ref)

    print("KERNEL_OK")
</pallas_src>

<mosaic_0001>
module attributes {stable_mosaic.version = 11 : i64} {
  func.func @_actor_kernel(%arg0: i32, %arg1: memref<8x24xbf16, #tpu.memory_space<vmem>>, %arg2: memref<24x128xbf16, #tpu.memory_space<vmem>>, %arg3: memref<1x128xf32, #tpu.memory_space<vmem>>, %arg4: memref<128x128xbf16, #tpu.memory_space<vmem>>, %arg5: memref<1x128xf32, #tpu.memory_space<vmem>>, %arg6: memref<128x128xbf16, #tpu.memory_space<vmem>>, %arg7: memref<1x128xf32, #tpu.memory_space<vmem>>, %arg8: memref<128x128xbf16, #tpu.memory_space<vmem>>, %arg9: memref<1x128xf32, #tpu.memory_space<vmem>>, %arg10: memref<8x128xf32, #tpu.memory_space<vmem>>) attributes {dimension_semantics = [#tpu.dimension_semantics<parallel>], iteration_bounds = array<i64: 1>, scalar_prefetch = 0 : i64, scratch_operands = 0 : i64, tpu.core_type = #tpu.core_type<tc>, window_params = [{transform_indices = @transform_0, window_bounds = array<i64: 8, 24>}, {pipeline_mode = #tpu.pipeline_mode<synchronous>, transform_indices = @transform_1, window_bounds = array<i64: 24, 128>}, {pipeline_mode = #tpu.pipeline_mode<synchronous>, transform_indices = @transform_2, window_bounds = array<i64: 1, 128>}, {pipeline_mode = #tpu.pipeline_mode<synchronous>, transform_indices = @transform_3, window_bounds = array<i64: 128, 128>}, {pipeline_mode = #tpu.pipeline_mode<synchronous>, transform_indices = @transform_4, window_bounds = array<i64: 1, 128>}, {pipeline_mode = #tpu.pipeline_mode<synchronous>, transform_indices = @transform_5, window_bounds = array<i64: 128, 128>}, {pipeline_mode = #tpu.pipeline_mode<synchronous>, transform_indices = @transform_6, window_bounds = array<i64: 1, 128>}, {pipeline_mode = #tpu.pipeline_mode<synchronous>, transform_indices = @transform_7, window_bounds = array<i64: 128, 128>}, {pipeline_mode = #tpu.pipeline_mode<synchronous>, transform_indices = @transform_8, window_bounds = array<i64: 1, 128>}, {transform_indices = @transform_9, window_bounds = array<i64: 8, 128>}]} {
    %c0 = arith.constant 0 : index
    %c0_0 = arith.constant 0 : index
    %0 = vector.load %arg1[%c0, %c0_0] : memref<8x24xbf16, #tpu.memory_space<vmem>>, vector<8x24xbf16>
    %c0_1 = arith.constant 0 : index
    %c0_2 = arith.constant 0 : index
    %1 = vector.load %arg2[%c0_1, %c0_2] : memref<24x128xbf16, #tpu.memory_space<vmem>>, vector<24x128xbf16>
    %cst = arith.constant dense<0.000000e+00> : vector<8x128xf32>
    %2 = tpu.matmul %0, %1, %cst {dimension_numbers = #tpu.dot_dimension_numbers<[1], [0], [0], [1], [0, 0, 1, 1], [], []>} : vector<8x24xbf16>, vector<24x128xbf16>, vector<8x128xf32> -> vector<8x128xf32>
    %c0_3 = arith.constant 0 : index
    %c0_4 = arith.constant 0 : index
    %3 = vector.load %arg3[%c0_3, %c0_4] : memref<1x128xf32, #tpu.memory_space<vmem>>, vector<1x128xf32>
    %4 = vector.broadcast %3 : vector<1x128xf32> to vector<8x128xf32>
    %5 = arith.addf %2, %4 : vector<8x128xf32>
    %cst_5 = arith.constant 0.000000e+00 : f32
    %6 = vector.broadcast %cst_5 : f32 to vector<8x128xf32>
    %7 = arith.maximumf %5, %6 : vector<8x128xf32>
    %8 = arith.truncf %7 : vector<8x128xf32> to vector<8x128xbf16>
    %c0_6 = arith.constant 0 : index
    %c0_7 = arith.constant 0 : index
    %9 = vector.load %arg4[%c0_6, %c0_7] : memref<128x128xbf16, #tpu.memory_space<vmem>>, vector<128x128xbf16>
    %cst_8 = arith.constant dense<0.000000e+00> : vector<8x128xf32>
    %10 = tpu.matmul %8, %9, %cst_8 {dimension_numbers = #tpu.dot_dimension_numbers<[1], [0], [0], [1], [0, 0, 1, 1], [], []>} : vector<8x128xbf16>, vector<128x128xbf16>, vector<8x128xf32> -> vector<8x128xf32>
    %c0_9 = arith.constant 0 : index
    %c0_10 = arith.constant 0 : index
    %11 = vector.load %arg5[%c0_9, %c0_10] : memref<1x128xf32, #tpu.memory_space<vmem>>, vector<1x128xf32>
    %12 = vector.broadcast %11 : vector<1x128xf32> to vector<8x128xf32>
    %13 = arith.addf %10, %12 : vector<8x128xf32>
    %cst_11 = arith.constant 0.000000e+00 : f32
    %14 = vector.broadcast %cst_11 : f32 to vector<8x128xf32>
    %15 = arith.maximumf %13, %14 : vector<8x128xf32>
    %16 = arith.truncf %15 : vector<8x128xf32> to vector<8x128xbf16>
    %c0_12 = arith.constant 0 : index
    %c0_13 = arith.constant 0 : index
    %17 = vector.load %arg6[%c0_12, %c0_13] : memref<128x128xbf16, #tpu.memory_space<vmem>>, vector<128x128xbf16>
    %cst_14 = arith.constant dense<0.000000e+00> : vector<8x128xf32>
    %18 = tpu.matmul %16, %17, %cst_14 {dimension_numbers = #tpu.dot_dimension_numbers<[1], [0], [0], [1], [0, 0, 1, 1], [], []>} : vector<8x128xbf16>, vector<128x128xbf16>, vector<8x128xf32> -> vector<8x128xf32>
    %c0_15 = arith.constant 0 : index
    %c0_16 = arith.constant 0 : index
    %19 = vector.load %arg7[%c0_15, %c0_16] : memref<1x128xf32, #tpu.memory_space<vmem>>, vector<1x128xf32>
    %20 = vector.broadcast %19 : vector<1x128xf32> to vector<8x128xf32>
    %21 = arith.addf %18, %20 : vector<8x128xf32>
    %cst_17 = arith.constant 0.000000e+00 : f32
    %22 = vector.broadcast %cst_17 : f32 to vector<8x128xf32>
    %23 = arith.maximumf %21, %22 : vector<8x128xf32>
    %24 = arith.truncf %23 : vector<8x128xf32> to vector<8x128xbf16>
    %c0_18 = arith.constant 0 : index
    %c0_19 = arith.constant 0 : index
    %25 = vector.load %arg8[%c0_18, %c0_19] : memref<128x128xbf16, #tpu.memory_space<vmem>>, vector<128x128xbf16>
    %cst_20 = arith.constant dense<0.000000e+00> : vector<8x128xf32>
    %26 = tpu.matmul %24, %25, %cst_20 {dimension_numbers = #tpu.dot_dimension_numbers<[1], [0], [0], [1], [0, 0, 1, 1], [], []>} : vector<8x128xbf16>, vector<128x128xbf16>, vector<8x128xf32> -> vector<8x128xf32>
    %c0_21 = arith.constant 0 : index
    %c0_22 = arith.constant 0 : index
    %27 = vector.load %arg9[%c0_21, %c0_22] : memref<1x128xf32, #tpu.memory_space<vmem>>, vector<1x128xf32>
    %28 = vector.broadcast %27 : vector<1x128xf32> to vector<8x128xf32>
    %29 = arith.addf %26, %28 : vector<8x128xf32>
    %30 = math.tanh %29 : vector<8x128xf32>
    %c0_23 = arith.constant 0 : index
    %c0_24 = arith.constant 0 : index
    %31 = vector.load %arg10[%c0_23, %c0_24] : memref<8x128xf32, #tpu.memory_space<vmem>>, vector<8x128xf32>
    tpu.vector_store %arg10[%c0_23, %c0_24], %30 {strides = array<i32>} : memref<8x128xf32, #tpu.memory_space<vmem>>, vector<8x128xf32>,
    return
  }
  func.func @transform_0(%arg0: i32) -> (i32, i32) {
    %c0_i32 = arith.constant 0 : i32
    %c0_i32_0 = arith.constant 0 : i32
    return %arg0, %c0_i32 : i32, i32
  }
  func.func @transform_1(%arg0: i32) -> (i32, i32) {
    %c0_i32 = arith.constant 0 : i32
    %c0_i32_0 = arith.constant 0 : i32
    %c0_i32_1 = arith.constant 0 : i32
    return %c0_i32, %c0_i32_0 : i32, i32
  }
  func.func @transform_2(%arg0: i32) -> (i32, i32) {
    %c0_i32 = arith.constant 0 : i32
    %c0_i32_0 = arith.constant 0 : i32
    %c0_i32_1 = arith.constant 0 : i32
    return %c0_i32, %c0_i32_0 : i32, i32
  }
  func.func @transform_3(%arg0: i32) -> (i32, i32) {
    %c0_i32 = arith.constant 0 : i32
    %c0_i32_0 = arith.constant 0 : i32
    %c0_i32_1 = arith.constant 0 : i32
    return %c0_i32, %c0_i32_0 : i32, i32
  }
  func.func @transform_4(%arg0: i32) -> (i32, i32) {
    %c0_i32 = arith.constant 0 : i32
    %c0_i32_0 = arith.constant 0 : i32
    %c0_i32_1 = arith.constant 0 : i32
    return %c0_i32, %c0_i32_0 : i32, i32
  }
  func.func @transform_5(%arg0: i32) -> (i32, i32) {
    %c0_i32 = arith.constant 0 : i32
    %c0_i32_0 = arith.constant 0 : i32
    %c0_i32_1 = arith.constant 0 : i32
    return %c0_i32, %c0_i32_0 : i32, i32
  }
  func.func @transform_6(%arg0: i32) -> (i32, i32) {
    %c0_i32 = arith.constant 0 : i32
    %c0_i32_0 = arith.constant 0 : i32
    %c0_i32_1 = arith.constant 0 : i32
    return %c0_i32, %c0_i32_0 : i32, i32
  }
  func.func @transform_7(%arg0: i32) -> (i32, i32) {
    %c0_i32 = arith.constant 0 : i32
    %c0_i32_0 = arith.constant 0 : i32
    %c0_i32_1 = arith.constant 0 : i32
    return %c0_i32, %c0_i32_0 : i32, i32
  }
  func.func @transform_8(%arg0: i32) -> (i32, i32) {
    %c0_i32 = arith.constant 0 : i32
    %c0_i32_0 = arith.constant 0 : i32
    %c0_i32_1 = arith.constant 0 : i32
    return %c0_i32, %c0_i32_0 : i32, i32
  }
  func.func @transform_9(%arg0: i32) -> (i32, i32) {
    %c0_i32 = arith.constant 0 : i32
    %c0_i32_0 = arith.constant 0 : i32
    return %arg0, %c0_i32 : i32, i32
  }
}

</mosaic_0001>

<bundles_post_ra>
// kernel: ddpg_actor_forward.1
= control target key start
LH: loop header
LB: loop body
LE: loop exit
PB: predicated region body
PF: predicated region fallthrough
CT: control target
= control target key end

     0   :  { %v605_v0 = vmov 0.0   ;;  %vm57_vm0 = vcmask 1043456   ;;  %vm606_vm1 = vmmov 0   ;;  %vm53_vm2 = vcmask 195584   ;;  %s787_s1 = inlined_call_operand.vmem [shape: bf16[24,128], index: 1, kind: input, shape index: {}]   ;;  %s788_s3 = inlined_call_operand.vmem [shape: bf16[128,128], index: 3, kind: input, shape index: {}]   ;;  %s789_s0 = inlined_call_operand.vmem [shape: bf16[8,24], index: 0, kind: input, shape index: {}]   ;;  %s790_s5 = inlined_call_operand.vmem [shape: bf16[128,128], index: 5, kind: input, shape index: {}]   ;;  %s791_s2 = inlined_call_operand.vmem [shape: f32[1,128], index: 2, kind: input, shape index: {}]   ;;  %s792_s7 = inlined_call_operand.vmem [shape: bf16[128,128], index: 7, kind: input, shape index: {}]   ;;  %s793_s4 = inlined_call_operand.vmem [shape: f32[1,128], index: 4, kind: input, shape index: {}]   ;;  %s794_s6 = inlined_call_operand.vmem [shape: f32[1,128], index: 6, kind: input, shape index: {}]   ;;  %s795_s8 = inlined_call_operand.vmem [shape: f32[1,128], index: 8, kind: input, shape index: {}]   ;;  %s796_s9 = inlined_call_operand.vmem [shape: f32[8,128], index: 9, kind: output, shape index: {}]  }
   0x1   :  { %507 = vmatprep.subr.bf16.mxu0 %v605_v0  ;;  %v577_v1 = vld [vmem:[%s787_s1] sm:$0xff]   ;;  %511 = vmatprep.mubr.msk.bf16.mxu0 %vm606_vm1, %v605_v0  ;;  %v578_v2 = vld [vmem:[%s787_s1 + $0x8] ss:$0 sps:$4 sm:$0xff]   ;;  %v581_v7 = vld [vmem:[%s788_s3 + $0x10] sm:$0xff]  }
   0x2   :  { %515 = vmatprep.subr.bf16.mxu1 %v605_v0  ;;  %531 = vmatprep.mubr.msk.bf16.mxu1 %vm606_vm1, %v605_v0  ;;  %v579_v3 = vld [vmem:[%s788_s3] sm:$0xff]   ;;  %v59_v4 = vsel %vm57_vm0, %v578_v2, 0  ;;  %v580_v5 = vld [vmem:[%s788_s3 + $0x8] sm:$0xff]   ;;  %v582_v8 = vld [vmem:[%s788_s3 + $0x18] sm:$0xff]  }
   0x3   :  { %508 = vmatpush3.bf16.msra.mxu0 %v577_v1  ;;  %516 = vmatpush3.bf16.msra.mxu1 %v579_v3  ;;  %v33_v6 = vld [vmem:[%s789_s0] sm:$0xf]  ;;  %v584_v10 = vld [vmem:[%s788_s3 + $0x28] sm:$0xff]   ;;  %v585_v11 = vld [vmem:[%s788_s3 + $0x30] sm:$0xff]  }
   0x4   :  { %509 = vmatprep.subr.bf16.mxu0 %v605_v0  ;;  %517 = vmatprep.subr.bf16.mxu1 %v605_v0  ;;  %v583_v9 = vld [vmem:[%s788_s3 + $0x20] sm:$0xff]   ;;  %v586_v12 = vld [vmem:[%s788_s3 + $0x38] sm:$0xff]   ;;  %v588_v14 = vld [vmem:[%s790_s5 + $0x8] sm:$0xff]  }
   0x5   :  { %v587_v13 = vld [vmem:[%s790_s5] sm:$0xff]   ;;  %v589_v15 = vld [vmem:[%s790_s5 + $0x10] sm:$0xff]   ;;  %v590_v16 = vld [vmem:[%s790_s5 + $0x18] sm:$0xff]  }
   0x6   :  { %v591_v17 = vld [vmem:[%s790_s5 + $0x20] sm:$0xff]   ;;  %v592_v18 = vld [vmem:[%s790_s5 + $0x28] sm:$0xff]   ;;  %v593_v27 = vld [vmem:[%s790_s5 + $0x30] sm:$0xff]  }
   0x7   :  { %510 = vmatpush3.bf16.msra.mxu0 %v59_v4  ;;  %518 = vmatpush3.bf16.msra.mxu1 %v580_v5  ;;  %v446_v19 = vld [vmem:[%s791_s2] ss:$0 sm:$0xff]  ;;  %v594_v28 = vld [vmem:[%s790_s5 + $0x38] sm:$0xff]   ;;  %v596_v30 = vld [vmem:[%s792_s7 + $0x8] sm:$0xff]  }
   0x8   :  { %535 = vmatprep.subr.bf16.mxu0 %v605_v0  ;;  %519 = vmatprep.subr.bf16.mxu1 %v605_v0  ;;  %v595_v29 = vld [vmem:[%s792_s7] sm:$0xff]   ;;  %v597_v31 = vld [vmem:[%s792_s7 + $0x10] sm:$0xff]   ;;  %v598_v32 = vld [vmem:[%s792_s7 + $0x18] sm:$0xff]  }
   0x9   :  { %v599_v33 = vld [vmem:[%s792_s7 + $0x20] sm:$0xff]   ;;  %v600_v34 = vld [vmem:[%s792_s7 + $0x28] sm:$0xff]   ;;  %v601_v43 = vld [vmem:[%s792_s7 + $0x30] sm:$0xff]  }
   0xa   :  { %512 = vmatmul.mubr.msk.bf16.vlgmr.msra.gmra.mrb[0].mxu0 %vm53_vm2, %v33_v6  ;;  %v450_v35 = vld [vmem:[%s793_s4] ss:$0 sm:$0xff]  ;;  %v602_v44 = vld [vmem:[%s792_s7 + $0x38] sm:$0xff]  }
   0xb   :  { %551 = vmatprep.mubr.msk.bf16.mxu0 %vm606_vm1, %v605_v0  ;;  %520 = vmatpush3.bf16.msra.mxu1 %v581_v7  ;;  %v459_v45 = vld [vmem:[%s794_s6] ss:$0 sm:$0xff] }
   0xc   :  { %521 = vmatprep.subr.bf16.mxu1 %v605_v0  ;;  %536 = vmatpush3.bf16.msra.mxu0 %v587_v13  ;;  %v468_v53 = vld [vmem:[%s795_s8] ss:$0 sm:$0xff] }
   0xd   :  { %537 = vmatprep.subr.bf16.mxu0 %v605_v0 }
   0xf   :  { %522 = vmatpush3.bf16.msra.mxu1 %v582_v8 }
  0x10   :  { %523 = vmatprep.subr.bf16.mxu1 %v605_v0  ;;  %538 = vmatpush3.bf16.msra.mxu0 %v588_v14 }
  0x11   :  { %539 = vmatprep.subr.bf16.mxu0 %v605_v0 }
  0x13   :  { %524 = vmatpush3.bf16.msra.mxu1 %v583_v9 }
  0x14   :  { %525 = vmatprep.subr.bf16.mxu1 %v605_v0  ;;  %540 = vmatpush3.bf16.msra.mxu0 %v589_v15 }
  0x15   :  { %541 = vmatprep.subr.bf16.mxu0 %v605_v0 }
  0x17   :  { %526 = vmatpush3.bf16.msra.mxu1 %v584_v10 }
  0x18   :  { %527 = vmatprep.subr.bf16.mxu1 %v605_v0  ;;  %542 = vmatpush3.bf16.msra.mxu0 %v590_v16 }
  0x19   :  { %543 = vmatprep.subr.bf16.mxu0 %v605_v0 }
  0x1b   :  { %528 = vmatpush3.bf16.msra.mxu1 %v585_v11 }
  0x1c   :  { %529 = vmatprep.subr.bf16.mxu1 %v605_v0  ;;  %544 = vmatpush3.bf16.msra.mxu0 %v591_v17 }
  0x1d   :  { %545 = vmatprep.subr.bf16.mxu0 %v605_v0 }
  0x1f   :  { %530 = vmatpush3.bf16.msra.mxu1 %v586_v12 }
  0x20   :  { %555 = vmatprep.subr.bf16.mxu1 %v605_v0  ;;  %546 = vmatpush3.bf16.msra.mxu0 %v592_v18 }
  0x21   :  { %547 = vmatprep.subr.bf16.mxu0 %v605_v0 }
  0x24   :  { %548 = vmatpush3.bf16.msra.mxu0 %v593_v27 }
  0x25   :  { %549 = vmatprep.subr.bf16.mxu0 %v605_v0 }
  0x28   :  { %550 = vmatpush3.bf16.msra.mxu0 %v594_v28 }
  0xdd   :  { %v95_v20 = vpop.f32.mrb[0].mxu0 }
  0xde   :  { %v96_v21 = vadd.f32 %v446_v19, %v95_v20  ;;  %v513_v22 = vpop.f32.mrb[1].mxu0 }
  0xdf   :  { %v98_v23 = vpop.f32.mrb[2].mxu0 }
  0xe0   :  { %v101_v24 = vmax.f32 %v96_v21, 0.0  ;;  %v514_v25 = vpop.f32.mrb[3].mxu0 }
  0xe2   :  { %v102_v26 = vpack.c.bf16 %v101_v24, %v101_v24 }
  0xe4   :  { %532 = vmatmul.mubr.bf16.vlgmr.msra.gmra.mrb[0].mxu1 %v102_v26 }
  0xe5   :  { %571 = vmatprep.mubr.msk.bf16.mxu1 %vm606_vm1, %v605_v0  ;;  %556 = vmatpush3.bf16.msra.mxu1 %v595_v29 }
  0xe6   :  { %557 = vmatprep.subr.bf16.mxu1 %v605_v0 }
  0xe9   :  { %558 = vmatpush3.bf16.msra.mxu1 %v596_v30 }
  0xea   :  { %559 = vmatprep.subr.bf16.mxu1 %v605_v0 }
  0xed   :  { %560 = vmatpush3.bf16.msra.mxu1 %v597_v31 }
  0xee   :  { %561 = vmatprep.subr.bf16.mxu1 %v605_v0 }
  0xf1   :  { %562 = vmatpush3.bf16.msra.mxu1 %v598_v32 }
  0xf2   :  { %563 = vmatprep.subr.bf16.mxu1 %v605_v0 }
  0xf5   :  { %564 = vmatpush3.bf16.msra.mxu1 %v599_v33 }
  0xf6   :  { %565 = vmatprep.subr.bf16.mxu1 %v605_v0 }
  0xf9   :  { %566 = vmatpush3.bf16.msra.mxu1 %v600_v34 }
  0xfa   :  { %567 = vmatprep.subr.bf16.mxu1 %v605_v0 }
  0xfd   :  { %568 = vmatpush3.bf16.msra.mxu1 %v601_v43 }
  0xfe   :  { %569 = vmatprep.subr.bf16.mxu1 %v605_v0 }
 0x101   :  { %570 = vmatpush3.bf16.msra.mxu1 %v602_v44 }
 0x1b7   :  { %v208_v36 = vpop.f32.mrb[0].mxu1 }
 0x1b8   :  { %v209_v37 = vadd.f32 %v450_v35, %v208_v36  ;;  %v533_v38 = vpop.f32.mrb[1].mxu1 }
 0x1b9   :  { %v211_v39 = vpop.f32.mrb[2].mxu1 }
 0x1ba   :  { %v214_v40 = vmax.f32 %v209_v37, 0.0  ;;  %v534_v41 = vpop.f32.mrb[3].mxu1 }
 0x1bc   :  { %v215_v42 = vpack.c.bf16 %v214_v40, %v214_v40 }
 0x1be   :  { %552 = vmatmul.mubr.bf16.vlgmr.msra.gmra.mrb[4].mxu0 %v215_v42 }
 0x291   :  { %v321_v46 = vpop.f32.mrb[4].mxu0 }
 0x292   :  { %v322_v47 = vadd.f32 %v459_v45, %v321_v46  ;;  %v553_v48 = vpop.f32.mrb[5].mxu0 }
 0x293   :  { %v324_v49 = vpop.f32.mrb[6].mxu0 }
 0x294   :  { %v327_v50 = vmax.f32 %v322_v47, 0.0  ;;  %v554_v51 = vpop.f32.mrb[7].mxu0 }
 0x296   :  { %v328_v52 = vpack.c.bf16 %v327_v50, %v327_v50 }
 0x298   :  { %572 = vmatmul.mubr.bf16.vlgmr.msra.gmra.mrb[4].mxu1 %v328_v52 }
 0x36b   :  { %v434_v54 = vpop.f32.mrb[4].mxu1 }
 0x36c   :  { %v435_v55 = vadd.f32 %v468_v53, %v434_v54  ;;  %v573_v56 = vpop.f32.mrb[5].mxu1 }
 0x36d   :  { %v437_v57 = vpop.f32.mrb[6].mxu1 }
 0x36e   :  { %603 = vtanh.f32 %v435_v55  ;;  %v574_v58 = vpop.f32.mrb[7].mxu1 }
 0x378   :  { %v604_v59 = vpop.eup %603 }
 0x379   :  { %441 = vst [vmem:[%s796_s9] sm:$0xff] %v604_v59 }

</bundles_post_ra>
